<compile_context>
chip_gen: v7x
topology: tpu7x:2x2x1
jax: 0.10.0
libtpu: 0.0.40
codegen_flags: <defaults>
</compile_context>

<pallas_src>
import jax
import jax.numpy as jnp
from jax import lax
from jax.experimental import pallas as pl
from jax.experimental.pallas import tpu as pltpu


def _conv_bn_relu_kernel(w_ref, b_ref, p_ref, o_ref):
    # w_ref: (COUT, K)   bf16  BN-scale-folded weights (small, resident)
    # b_ref: (COUT, 1)   f32   folded BN bias
    # p_ref: (K, TS)     bf16  im2col patches for one batch element / lane tile
    # o_ref: (COUT, TS)  bf16  lane-dense output tile
    acc = jnp.dot(w_ref[...], p_ref[...], preferred_element_type=jnp.float32)
    o_ref[...] = jnp.maximum(acc + b_ref[...], 0.0).astype(o_ref.dtype)


def _tpu_generation():
    """(num_tensorcores_per_chip, vmem_cap_bytes, per-step tile budget bytes)."""
    kind = ""
    try:
        kind = jax.devices()[0].device_kind.lower()
    except Exception:
        pass
    is_v7 = ("v7" in kind) or ("7x" in kind)
    num_tc = 2 if is_v7 else 1
    vmem_cap = (64 << 20) if is_v7 else (128 << 20)
    tile_budget = (12 << 20) if is_v7 else (24 << 20)
    return num_tc, vmem_cap, tile_budget


def _pick_lane_tile(s_per, k, cout, n_batch, *, tile_budget_bytes, num_tc):
    """Lane tile for the per-image OH*OW axis.

    Largest multiple-of-128 divisor of s_per that fits the double-buffered
    VMEM budget (patch tile bf16 + output tile bf16).  On multi-TC chips
    (v7x) make sure the total grid has >=num_tc parallel steps.
    """
    if s_per % 128 != 0:
        return s_per  # full-extent block: correct (masked stores, perf only)
    per_lane = 2 * (2 * k + 2 * cout)          # x2 for double buffering
    max_lanes = max(128, (tile_budget_bytes // per_lane) // 128 * 128)
    ts = min(s_per, max_lanes)
    while s_per % ts != 0:                     # stay a divisor, multiple of 128
        ts -= 128
    if num_tc > 1 and n_batch * (s_per // ts) < num_tc and ts % 256 == 0:
        ts //= 2                               # give the second TensorCore work
    return ts


def basic_conv_pallas(x_nchw, w_oihw, gamma, beta, running_mean, running_var,
                      *, stride=1, padding=1, dilation=1, groups=1, eps=1e-5):
    """Conv2d(bias=False) + BatchNorm2d(eval) + ReLU, matching PyTorch BasicConv.

    x_nchw: (N, Cin, H, W)   w_oihw: (Cout, Cin, KH, KW)
    Returns (N, Cout, OH, OW) in NCHW (bfloat16).
    """
    assert stride == 1 and dilation == 1 and groups == 1, (
        "only stride=1, dilation=1, groups=1 is implemented")
    N, CIN, H, W = x_nchw.shape
    COUT, cin_w, KH, KW = w_oihw.shape
    assert cin_w == CIN
    OH = H + 2 * padding - (KH - 1)
    OW = W + 2 * padding - (KW - 1)
    K = CIN * KH * KW
    OHW = OH * OW

    # ---- wrapper glue (tiny XLA ops): BN fold, bf16 cast, zero-pad, im2col ----
    scale = (gamma / jnp.sqrt(running_var + eps)).astype(jnp.float32)
    bias = (beta - running_mean * scale).astype(jnp.float32)
    w_mat = (w_oihw.astype(jnp.float32) * scale[:, None, None, None])
    w_mat = w_mat.reshape(COUT, K).astype(jnp.bfloat16)            # (COUT, K)
    bias_col = bias.reshape(COUT, 1)                               # (COUT, 1) f32

    x_b = x_nchw.astype(jnp.bfloat16)
    x_pad = jnp.pad(x_b, ((0, 0), (0, 0), (padding, padding), (padding, padding)))
    taps = [x_pad[:, :, kh:kh + OH, kw:kw + OW]                    # each (N,CIN,OH,OW)
            for kh in range(KH) for kw in range(KW)]
    patches = jnp.stack(taps, axis=2)                              # (N,CIN,KH*KW,OH,OW)
    patches = patches.reshape(N, K, OHW)   # k = c*KH*KW + kh*KW + kw (matches w_mat)

    num_tc, vmem_cap, tile_budget = _tpu_generation()
    ts = _pick_lane_tile(OHW, K, COUT, N,
                         tile_budget_bytes=tile_budget, num_tc=num_tc)
    grid = (N, OHW // ts if OHW % ts == 0 else 1)

    # Only raise the scoped-VMEM limit if the double-buffered tiles need it.
    vmem_needed = (2 * (2 * K * ts + 2 * COUT * ts)
                   + 2 * K * COUT + 4 * COUT + (1 << 20))
    vmem_limit = None
    if vmem_needed > (32 << 20):
        vmem_limit = min(vmem_needed + (8 << 20), vmem_cap)

    cost = pl.CostEstimate(
        flops=2 * COUT * K * N * OHW,
        transcendentals=0,
        bytes_accessed=(w_mat.size * 2 + bias_col.size * 4
                        + patches.size * 2 + N * COUT * OHW * 2),
    )

    out_flat = pl.pallas_call(
        _conv_bn_relu_kernel,
        out_shape=jax.ShapeDtypeStruct((N, COUT, OHW), jnp.bfloat16),
        grid_spec=pltpu.PrefetchScalarGridSpec(
            num_scalar_prefetch=0,
            grid=grid,
            in_specs=[
                pl.BlockSpec((COUT, K), lambda n, s: (0, 0)),        # weights
                pl.BlockSpec((COUT, 1), lambda n, s: (0, 0)),        # folded BN bias
                pl.BlockSpec((None, K, ts), lambda n, s: (n, 0, s)),  # patches
            ],
            out_specs=pl.BlockSpec((None, COUT, ts), lambda n, s: (n, 0, s)),
        ),
        compiler_params=pltpu.CompilerParams(
            dimension_semantics=("parallel", "parallel"),
            vmem_limit_bytes=vmem_limit),
        cost_estimate=cost,
    )(w_mat, bias_col, patches)

    # (N, COUT, OH*OW) -> (N, COUT, OH, OW): free reshape, no transpose.
    return out_flat.reshape(N, COUT, OH, OW)


# ------------------------------ references ----------------------------------
def _reference_f32(x, w, gamma, beta, mean, var, *, padding=1, eps=1e-5):
    y = lax.conv_general_dilated(
        x.astype(jnp.float32), w.astype(jnp.float32),
        window_strides=(1, 1), padding=[(padding, padding), (padding, padding)],
        dimension_numbers=("NCHW", "OIHW", "NCHW"),
        precision=lax.Precision.HIGHEST)
    scale = gamma / jnp.sqrt(var + eps)
    bias = beta - mean * scale
    return jnp.maximum(y * scale[None, :, None, None] + bias[None, :, None, None], 0.0)


def _reference_bf16(x, w, gamma, beta, mean, var, *, padding=1, eps=1e-5):
    # Emulates the kernel's bf16-operand / f32-accumulate arithmetic.
    scale = gamma / jnp.sqrt(var + eps)
    bias = beta - mean * scale
    w_s = (w.astype(jnp.float32) * scale[:, None, None, None]
           ).astype(jnp.bfloat16).astype(jnp.float32)
    x_b = x.astype(jnp.bfloat16).astype(jnp.float32)
    y = lax.conv_general_dilated(
        x_b, w_s, window_strides=(1, 1),
        padding=[(padding, padding), (padding, padding)],
        dimension_numbers=("NCHW", "OIHW", "NCHW"),
        precision=lax.Precision.HIGHEST)
    return jnp.maximum(y + bias[None, :, None, None], 0.0)


if __name__ == "__main__":
    # BasicConv(in_planes=4, out_planes=8, kernel_size=3, padding=1)
    N, CIN, H, W = 2, 4, 16, 16
    COUT, KH, KW = 8, 3, 3
    PAD = 1

    key = jax.random.PRNGKey(0)
    kx, kw_, kg, kb, km, kv = jax.random.split(key, 6)

    x = jax.random.normal(kx, (N, CIN, H, W), dtype=jnp.float32)
    w = jax.random.normal(kw_, (COUT, CIN, KH, KW), dtype=jnp.float32) * 0.1
    gamma = 1.0 + 0.1 * jax.random.normal(kg, (COUT,), dtype=jnp.float32)
    beta = 0.1 * jax.random.normal(kb, (COUT,), dtype=jnp.float32)
    running_mean = 0.05 * jax.random.normal(km, (COUT,), dtype=jnp.float32)
    running_var = jnp.abs(1.0 + 0.1 * jax.random.normal(kv, (COUT,), dtype=jnp.float32))

    out = basic_conv_pallas(x, w, gamma, beta, running_mean, running_var, padding=PAD)
    out = jax.block_until_ready(out)
    assert out.shape == (N, COUT, H, W), out.shape
    assert out.dtype == jnp.bfloat16, out.dtype
    out_f = out.astype(jnp.float32)

    # Tight check against a reference using the same bf16-operand math,
    # rounded to bf16 like the kernel's output store.
    ref_b = _reference_bf16(x, w, gamma, beta, running_mean, running_var, padding=PAD)
    ref_b_q = ref_b.astype(jnp.bfloat16).astype(jnp.float32)
    err_b = float(jnp.max(jnp.abs(out_f - ref_b_q)))
    assert jnp.allclose(out_f, ref_b_q, rtol=1e-2, atol=1e-2), err_b

    # Loose sanity check against the full-f32 PyTorch-equivalent semantics.
    ref_f = _reference_f32(x, w, gamma, beta, running_mean, running_var, padding=PAD)
    err_f = float(jnp.max(jnp.abs(out_f - ref_f)))
    assert jnp.allclose(out_f, ref_f, rtol=5e-2, atol=5e-2), err_f

    print("KERNEL_OK")
</pallas_src>

<mosaic_0001>
module attributes {stable_mosaic.version = 11 : i64} {
  func.func @_conv_bn_relu_kernel(%arg0: i32, %arg1: i32, %arg2: memref<8x36xbf16, #tpu.memory_space<vmem>>, %arg3: memref<8x1xf32, #tpu.memory_space<vmem>>, %arg4: memref<1x36x256xbf16, #tpu.memory_space<vmem>>, %arg5: memref<1x8x256xbf16, #tpu.memory_space<vmem>>) attributes {dimension_semantics = [#tpu.dimension_semantics<parallel>, #tpu.dimension_semantics<parallel>], iteration_bounds = array<i64: 2, 1>, scalar_prefetch = 0 : i64, scratch_operands = 0 : i64, tpu.core_type = #tpu.core_type<tc>, window_params = [{pipeline_mode = #tpu.pipeline_mode<synchronous>, transform_indices = @transform_0, window_bounds = array<i64: 8, 36>}, {pipeline_mode = #tpu.pipeline_mode<synchronous>, transform_indices = @transform_1, window_bounds = array<i64: 8, 1>}, {transform_indices = @transform_2, window_bounds = array<i64: 1, 36, 256>}, {transform_indices = @transform_3, window_bounds = array<i64: 1, 8, 256>}]} {
    %c0 = arith.constant 0 : index
    %c0_0 = arith.constant 0 : index
    %0 = vector.load %arg2[%c0, %c0_0] : memref<8x36xbf16, #tpu.memory_space<vmem>>, vector<8x36xbf16>
    %c0_1 = arith.constant 0 : index
    %c0_2 = arith.constant 0 : index
    %c0_3 = arith.constant 0 : index
    %1 = vector.load %arg4[%c0_1, %c0_2, %c0_3] : memref<1x36x256xbf16, #tpu.memory_space<vmem>>, vector<1x36x256xbf16>
    %2 = vector.shape_cast %1 : vector<1x36x256xbf16> to vector<36x256xbf16>
    %cst = arith.constant dense<0.000000e+00> : vector<8x256xf32>
    %3 = tpu.matmul %0, %2, %cst {dimension_numbers = #tpu.dot_dimension_numbers<[1], [0], [0], [1], [0, 0, 1, 1], [], []>} : vector<8x36xbf16>, vector<36x256xbf16>, vector<8x256xf32> -> vector<8x256xf32>
    %c0_4 = arith.constant 0 : index
    %c0_5 = arith.constant 0 : index
    %4 = vector.load %arg3[%c0_4, %c0_5] : memref<8x1xf32, #tpu.memory_space<vmem>>, vector<8x1xf32>
    %5 = vector.broadcast %4 : vector<8x1xf32> to vector<8x256xf32>
    %6 = arith.addf %3, %5 : vector<8x256xf32>
    %cst_6 = arith.constant 0.000000e+00 : f32
    %7 = vector.broadcast %cst_6 : f32 to vector<8x256xf32>
    %8 = arith.maximumf %6, %7 : vector<8x256xf32>
    %9 = arith.truncf %8 : vector<8x256xf32> to vector<8x256xbf16>
    %c0_7 = arith.constant 0 : index
    %c0_8 = arith.constant 0 : index
    %c0_9 = arith.constant 0 : index
    %10 = vector.load %arg5[%c0_7, %c0_8, %c0_9] : memref<1x8x256xbf16, #tpu.memory_space<vmem>>, vector<1x8x256xbf16>
    %11 = vector.shape_cast %10 : vector<1x8x256xbf16> to vector<8x256xbf16>
    %12 = vector.shape_cast %9 : vector<8x256xbf16> to vector<1x8x256xbf16>
    tpu.vector_store %arg5[%c0_7, %c0_8, %c0_9], %12 {strides = array<i32>} : memref<1x8x256xbf16, #tpu.memory_space<vmem>>, vector<1x8x256xbf16>,
    return
  }
  func.func @transform_0(%arg0: i32, %arg1: i32) -> (i32, i32) {
    %c0_i32 = arith.constant 0 : i32
    %c0_i32_0 = arith.constant 0 : i32
    %c0_i32_1 = arith.constant 0 : i32
    return %c0_i32, %c0_i32_0 : i32, i32
  }
  func.func @transform_1(%arg0: i32, %arg1: i32) -> (i32, i32) {
    %c0_i32 = arith.constant 0 : i32
    %c0_i32_0 = arith.constant 0 : i32
    %c0_i32_1 = arith.constant 0 : i32
    return %c0_i32, %c0_i32_0 : i32, i32
  }
  func.func @transform_2(%arg0: i32, %arg1: i32) -> (i32, i32, i32) {
    %c0_i32 = arith.constant 0 : i32
    %c0_i32_0 = arith.constant 0 : i32
    return %arg0, %c0_i32, %arg1 : i32, i32, i32
  }
  func.func @transform_3(%arg0: i32, %arg1: i32) -> (i32, i32, i32) {
    %c0_i32 = arith.constant 0 : i32
    %c0_i32_0 = arith.constant 0 : i32
    return %arg0, %c0_i32, %arg1 : i32, i32, i32
  }
}

</mosaic_0001>

<bundles_post_ra>
// kernel: tpu_custom_call.1
= control target key start
LH: loop header
LB: loop body
LE: loop exit
PB: predicated region body
PF: predicated region fallthrough
CT: control target
= control target key end

     0   :  { %8 = vsyncpa [#allocation3], 0  ;;  %s703_s0 = inlined_call_operand.vmem [shape: bf16[8,36], index: 0, kind: input, shape index: {}]   ;;  %s704_s1 = inlined_call_operand.vmem [shape: f32[8,1], index: 1, kind: input, shape index: {}]   ;;  %s705_s2 = inlined_call_operand.vmem [shape: bf16[2,36,256], index: 2, kind: input, shape index: {}]   ;;  %s706_s3 = inlined_call_operand.hbm [shape: bf16[2,8,256], index: 3, kind: output, shape index: {}]  }
   0x1   :  { %10 = vsyncpa [#allocation3 + $0x1], 0  ;;  %s585_s12 = smov 0   ;;  %s587_s13 = smov 0  }
   0x2   :  { %s589_s14 = smov 0   ;;  %s591_s15 = smov 0  }
   0x3   :  { %s593_s16 = smov 0   ;;  %s595_s17 = smov 0  }
   0x4 LB: > { %s394_s18 = sadd.s32 4294967295, %s561_s17   ;;  %s395_s19 = sadd.s32 4294967294, %s561_s17   ;;  %s561_s17 = sphi %s595_s17, %s16_s17   ;;  %s557_s16 = sphi %s593_s16, %s713_s16   ;;  %s553_s15 = sphi %s591_s15, %s712_s15   ;;  %s549_s14 = sphi %s589_s14, %s711_s14   ;;  %s545_s13 = sphi %s587_s13, %s710_s13   ;;  %s541_s12 = sphi %s585_s12, %s709_s12  }
   0x5   : > { %s28_s20 = sadd.s32 1, %s557_s16  ;;  %s107_s21 = sadd.s32 1, %s549_s14 }
   0x6   : > { %p30_p0 = scmp.ge.s32.totalorder %s28_s20, 2  ;;  %p117_p1 = scmp.ne.s32.totalorder %s549_s14, %s545_s13 }
   0x7   : > { %p118_p2 = scmp.eq.s32.totalorder %s394_s18, 1  ;;  %p123_p3 = scmp.ne.s32.totalorder %s545_s13, %s541_s12 }
   0x8   : > { %s715_s20 = smov (%p30_p0, %s28_s20), 0  ;;  %p124_p5 = scmp.eq.s32.totalorder %s395_s19, 1 }
   0x9   : > { %p625_p4 = por %p118_p2, %p117_p1  ;;  %s102_s23 = ssub.s32 %s557_s16, %s715_s20 }
   0xa   : > { %p398_p6 = scmp.ge.s32.totalorder %s561_s17, 1  ;;  %p105_p7 = scmp.eq.s32.totalorder %s102_s23, 0 }
   0xb   : > { %p632_p8 = por %p124_p5, %p123_p3  ;;  %p161_p9 = scmp.lt.s32.totalorder %s561_s17, 3 }
   0xc   : > { %s638_s25 = scalar_select %p105_p7, %s549_s14, %s107_s21  }
   0xd   : > { %p162_p10 = pnand %p398_p6, %p161_p9 }
   0xe   : > { %p190_p11 = scmp.lt.s32.totalorder (!%p162_p10), %s553_s15, 1  ;;  %v563_v0 = vmov (!%p162_p10), 0   ;;  %v207_v1 = vld [vmem:[%s704_s1] sm:$0xff] (!%p162_p10)  ;;  %vm242_vm0 = vcmask (!%p162_p10), 1041408   ;;  %vm238_vm1 = vcmask (!%p162_p10), 293888   ;;  %s186_s8 = sand.u32 (!%p162_p10), 1, %s545_s13  }
   0xf   : > { %165 = sbr.rel (%p162_p10) target bundleno = 273 (0x111), region = 32  ;;  %281 = vmatprep.mubr.bf16.mxu0 (!%p162_p10), %v563_v0  ;;  %474 = vset.pattern.permute.xlu0 (!%p162_p10), %v563_v0  ;;  %v201_v10 = vld [vmem:[%s703_s0] sm:$0xf] (!%p162_p10)  ;;  %s399_s9 = sshll.u32 (!%p162_p10), %s186_s8, 3 }
  0x10   : > { %210 = vperm.xlu0 (!%p162_p10), %474, %v207_v1   ;;  %s416_s10 = sshll.u32 (!%p162_p10), %s553_s15, 7  ;;  %s188_s11 = scalar_lea.vmem (!%p162_p10), [#allocation2], %s399_s9 }
  0x11   : > { %s318_s18 = sshll.u32 (!%p162_p10), %s188_s11, 4  ;;  %s656_s23 = scalar_lea.hbm (!%p162_p10), %s706_s3, %s416_s10  ;;  %s658_s18 = int_to_ptr.vmem [resolvable:$true] %s318_s18 }
  0x12   : > { %s302_s26 = scalar_lea.sflag (!%p162_p10), [#allocation3], %s186_s8  ;;  %s483_s27 = scalar_lea.vmem (!%p162_p10), %s658_s18, 128 }
  0x13   : > { %p484_p12 = scmp.ne.s32.totalorder (!%p162_p10), %s658_s18, %s483_s27 }
  0x15   : > { %p485_p13 = pnand (!%p162_p10), %p484_p12, %p625_p4 }
  0x16   : > { %s191_s28 = scalar_select %p190_p11, %s553_s15, 1 }
  0x17   : > { %p486_p0 = pneg %p485_p13  ;;  %s564_s15 = smov [#allocation2]  }
  0x18   : > { %s417_s29 = smul.u32 40, %s191_s28  ;;  %s487_s28 = sshll.u32 %s564_s15, 4  ;;  %s488_s28 = int_to_ptr.vmem [resolvable:$false] %s487_s28 }
  0x19   : > { %p490_p1 = scmp.lt.s32.totalorder %s658_s18, %s488_s28 }
  0x1a   : > { %s197_s5 = scalar_lea.vmem %s705_s2, %s417_s29  ;;  %s489_s29 = scalar_lea.vmem %s488_s28, 256 }
  0x1b   : > { %v475_v2 = vld [vmem:[%s197_s5 + $0x4] ss:$8 sps:$4 sm:$0xff]   ;;  %v477_v3 = vld [vmem:[%s197_s5] ss:$8 sps:$4 sm:$0xff]   ;;  %v478_v4 = vld [vmem:[%s197_s5 + $0x14] ss:$8 sps:$4 sm:$0xff]   ;;  %p491_p2 = scmp.lt.s32.totalorder %s489_s29, %s483_s27 }
  0x1c   : > { %249 = vmatprep.subr.bf16.mxu0 %v475_v2  ;;  %v206_v5 = vld [vmem:[%s197_s5 + $0x20] sm:$0x33]  ;;  %v480_v6 = vld [vmem:[%s197_s5 + $0x10] ss:$8 sps:$4 sm:$0xff]  }
  0x1d   : > { %250 = vmatpush1.bf16.msra.mxu0 %v477_v3  ;;  %v406_v7 = vcombine.high %v206_v5, %v206_v5  ;;  %v405_v8 = vcombine.low %v206_v5, %v206_v5  ;;  %p492_p3 = por %p491_p2, %p490_p1 }
  0x1e   : > { %251 = vmatprep.subr.bf16.mxu0 %v478_v4 }
  0x1f   : > { %v244_v9 = vsel %vm242_vm0, %v405_v8, 0  ;;  %p493_p5 = pnand %p492_p3, %p486_p0 }
  0x21   : > { %252 = vmatpush1.bf16.msra.mxu0 %v480_v6 }
  0x22   : > { %407 = vmatprep.subr.msk.bf16.mxu0 %vm242_vm0, %v406_v7 }
  0x25   : > { %254 = vmatpush1.bf16.msra.mxu0 %v244_v9 }
  0x28   : > { %408 = vmatmul.mubr.msk.bf16.vlgmr.msra.gmra.mrb[0].mxu0 %vm238_vm1, %v201_v10 }
  0x8f   : > { %v211_v11 = vpop.permute.xlu0 %210 }
  0xfb   : > { %v283_v12 = vpop.f32.mrb[0].mxu0 }
  0xfc   : > { %v284_v13 = vadd.f32 %v283_v12, %v211_v11  ;;  %v285_v14 = vpop.f32.mrb[1].mxu0 }
  0xfd   : > { %v286_v15 = vadd.f32 %v285_v14, %v211_v11  ;;  %v287_v16 = vpop.f32.mrb[2].mxu0 }
  0xfe   : > { %v290_v17 = vmax.f32 %v284_v13, 0.0  ;;  %v288_v18 = vpop.f32.mrb[3].mxu0 }
  0xff   : > { %v291_v19 = vmax.f32 %v286_v15, 0.0 }
 0x101   : > { %v415_v20 = vpack.c.bf16 %v291_v19, %v290_v17 }
 0x103   : > { %300 = vst [vmem:[%s188_s11] sm:$0xff] %v415_v20 }
 0x104   : > { %496 = shalt.err (!%p493_p5)
}
 0x105   : > { %s497_s30 = scalar_lea.hbm %s656_s23, 128  ;;  %s501_s6 = scalar_lea.hbm %s706_s3, 256 }
 0x106   : > { %p498_p6 = scmp.ne.s32.totalorder %s656_s23, %s497_s30  ;;  %p502_p10 = scmp.lt.u32.totalorder %s656_s23, %s706_s3 }
 0x107   : > { %p503_p11 = scmp.lt.u32.totalorder %s501_s6, %s497_s30  ;;  %p505_p13 = scmp.lt.u32.totalorder %s497_s30, %s656_s23 }
 0x108   : > { %p499_p7 = pnand %p498_p6, %p625_p4 }
 0x109   : > { %p504_p12 = por %p503_p11, %p502_p10 }
 0x10a   : > { %p500_p9 = pneg %p499_p7 }
 0x10b   : > { %p506_p0 = por %p505_p13, %p504_p12 }
 0x10d   : > { %p507_p1 = pnand %p506_p0, %p500_p9 }
 0x10f   : > { %510 = shalt.err (!%p507_p1)
}
 0x110   : > { %418 = dma.vmem_to_hbm [thread:$0]  (%p625_p4), %s658_s18, 128, %s656_s23, %s302_s26  }
 0x111 PF: > { %p424_p2 = scmp.ge.s32.totalorder %s561_s17, 2  ;;  %s330_s9 = sand.u32 1, %s541_s12  }
 0x112   : > { %s331_s10 = scalar_lea.sflag [#allocation3], %s330_s9 }
 0x113   : > { %p421_p3 = pnand %p424_p2, %p632_p8 }
 0x115   : > { %536 = dma.done.wait (!%p421_p3), %s331_s10, 128  }
 0x116   : > { %538 = vsyncadd (!%p421_p3), %s331_s10, 4294967168  ;;  %s16_s17 = sadd.s32 1, %s561_s17   ;;  %s709_s12 = smov %s545_s13 }
 0x117   : > { %p13_p5 = scmp.ge.s32.totalorder %s16_s17, 4   ;;  %s710_s13 = smov %s549_s14 }
 0x118   : > { %s711_s14 = smov %s638_s25  ;;  %s712_s15 = smov %s557_s16 }
 0x119   : > { %s713_s16 = smov %s715_s20  ;;  %15 = sbr.rel (!%p13_p5) target bundleno = 4 (0x4), region = 67 }
 0x120   :  { %336 = vsyncpa [#allocation3], 1 }
 0x121   :  { %338 = vsyncpa [#allocation3 + $0x1], 1 }

</bundles_post_ra>
